<compile_context>
chip_gen: v7x
topology: tpu7x:2x2x1
jax: 0.10.0
libtpu: 0.0.40
codegen_flags: <defaults>
</compile_context>

<pallas_src>
import functools

import jax
import jax.numpy as jnp
from jax.experimental import pallas as pl
from jax.experimental.pallas import tpu as pltpu

H1 = 512    # 500 padded to a multiple of 128 (zero-padded -> output unchanged)
H2 = 128    # 100 padded to a multiple of 128
SUB = 16    # bf16 sublane packing: keep batch tiles multiples of 16


def _round_up(x, m):
    return (x + m - 1) // m * m


def _softplus(x):
    # Matches torch.nn.Softplus(beta=1, threshold=20):
    #   x if x > 20 else log(1 + exp(x))
    safe = jnp.minimum(x, 20.0)
    return jnp.where(x > 20.0, x, jnp.log1p(jnp.exp(safe)))


def _default_act_dtype():
    """bf16 softplus on v6e/v7x (bf16 EUP ~halves the transcendental cost);
    f32 on v5e and older (no bf16 EUP/VPU) or unknown backends."""
    try:
        kind = jax.devices()[0].device_kind.lower()
    except Exception:
        return jnp.float32
    if ("v6" in kind) or ("v7" in kind) or ("7x" in kind):
        return jnp.bfloat16
    return jnp.float32


def ratio_critic_kernel(x_ref, w1_ref, b1_ref, w2_ref, b2_ref, w3_ref, b3_ref,
                        o_ref, *, act_dtype):
    # bf16 MXU operands with f32 accumulation; bias-add in f32; softplus in
    # act_dtype (bf16 on v6e/v7x, f32 on v5e).  Dropout = identity (eval mode).
    x = x_ref[...]
    if x.dtype != jnp.bfloat16:
        x = x.astype(jnp.bfloat16)

    z1 = jnp.dot(x, w1_ref[...], preferred_element_type=jnp.float32) + b1_ref[...]
    h1 = _softplus(z1.astype(act_dtype)).astype(jnp.bfloat16)
    z2 = jnp.dot(h1, w2_ref[...], preferred_element_type=jnp.float32) + b2_ref[...]
    h2 = _softplus(z2.astype(act_dtype)).astype(jnp.bfloat16)
    o_ref[...] = (jnp.dot(h2, w3_ref[...], preferred_element_type=jnp.float32)
                  + b3_ref[...]).astype(o_ref.dtype)


def ratio_critic_forward(x, params, dim_output, *, block_m=1024,
                         act_dtype=None, out_dtype=jnp.bfloat16):
    """x: (batch, 2*fc_in_features) activations from the two resnet14 heads,
    ideally already bf16 from the producer.  Returns (batch, dim_output)."""
    w1, b1, w2, b2, w3, b3 = params
    batch, din = x.shape
    dout_pad = w3.shape[1]
    if act_dtype is None:
        act_dtype = _default_act_dtype()

    # Batch tile: large enough to amortize per-grid-step overhead and fill the
    # MXU M dimension, but never collapse the grid to a single step when the
    # batch allows >=2 (keeps both v7x TensorCores busy).
    rb = _round_up(batch, SUB)
    tm = min(block_m, rb)
    if rb >= 2 * SUB and rb // tm < 2:
        tm = _round_up((rb + 1) // 2, SUB)
    pb = _round_up(batch, tm)
    if pb != batch:
        x = jnp.pad(x, ((0, pb - batch), (0, 0)))

    const = lambda i: (0, 0)   # weights/biases: one block, resident across grid
    tile = lambda i: (i, 0)

    x_bytes = jnp.dtype(x.dtype).itemsize
    out_bytes = jnp.dtype(out_dtype).itemsize
    flops = 2 * pb * (din * H1 + H1 * H2 + H2 * dout_pad)
    transcendentals = 2 * pb * (H1 + H2)   # exp + log1p per softplus element
    bytes_accessed = (pb * din * x_bytes + pb * dout_pad * out_bytes
                      + (din * H1 + H1 * H2 + H2 * dout_pad) * 2
                      + (H1 + H2 + dout_pad) * 4)

    kernel = functools.partial(ratio_critic_kernel, act_dtype=act_dtype)

    out = pl.pallas_call(
        kernel,
        out_shape=jax.ShapeDtypeStruct((pb, dout_pad), out_dtype),
        grid=(pb // tm,),
        in_specs=[
            pl.BlockSpec((tm, din), tile),        # x: tiled over batch (bf16)
            pl.BlockSpec((din, H1), const),       # w1 (bf16)
            pl.BlockSpec((1, H1), const),         # b1 (f32)
            pl.BlockSpec((H1, H2), const),        # w2 (bf16)
            pl.BlockSpec((1, H2), const),         # b2 (f32)
            pl.BlockSpec((H2, dout_pad), const),  # w3 (bf16)
            pl.BlockSpec((1, dout_pad), const),   # b3 (f32)
        ],
        out_specs=pl.BlockSpec((tm, dout_pad), tile),
        compiler_params=pltpu.CompilerParams(
            dimension_semantics=("parallel",),     # shard batch across TCs (v7x)
            vmem_limit_bytes=32 * 1024 * 1024,     # safe on v7x's 64 MiB VMEM
        ),
        cost_estimate=pl.CostEstimate(
            flops=flops,
            transcendentals=transcendentals,
            bytes_accessed=bytes_accessed),
    )(x, w1, b1, w2, b2, w3, b3)

    # TODO(synk): in a real pipeline, fuse this pad-removal slice into the
    # consumer (or keep consuming the padded lane-dense buffer) instead of
    # paying a standalone XLA slice pass over HBM.
    return out[:batch, :dim_output]


def init_params(key, dim_input, dim_output):
    """nn.Linear-style uniform(-1/sqrt(fan_in), ...) init on the true shapes,
    then zero-padded to lane-aligned widths (padding does not change the math).
    Weights stored bf16, biases f32."""
    dout_pad = _round_up(dim_output, 128)
    dims = [(dim_input, 500, dim_input, H1),
            (500, 100, H1, H2),
            (100, dim_output, H2, dout_pad)]
    params = []
    for i, (fi, fo, fi_p, fo_p) in enumerate(dims):
        kw, kb = jax.random.split(jax.random.fold_in(key, i))
        bound = 1.0 / (fi ** 0.5)
        w = jax.random.uniform(kw, (fi, fo), jnp.float32, -bound, bound)
        b = jax.random.uniform(kb, (1, fo), jnp.float32, -bound, bound)
        w = jnp.pad(w, ((0, fi_p - fi), (0, fo_p - fo))).astype(jnp.bfloat16)
        b = jnp.pad(b, ((0, 0), (0, fo_p - fo)))
        params += [w, b]
    return tuple(params)


def reference_forward(x, params, dim_output, *, act_dtype, out_dtype):
    """Pure-JAX reference applying identical casts (bf16 operands, f32 accum,
    act_dtype softplus, out_dtype store)."""
    w1, b1, w2, b2, w3, b3 = params

    def mm(a, w):
        return jax.lax.dot(a.astype(jnp.bfloat16), w,
                           preferred_element_type=jnp.float32)

    h1 = _softplus((mm(x, w1) + b1).astype(act_dtype)).astype(jnp.bfloat16)
    h2 = _softplus((mm(h1, w2) + b2).astype(act_dtype)).astype(jnp.bfloat16)
    out = (mm(h2, w3) + b3).astype(out_dtype)
    return out[:, :dim_output]


if __name__ == "__main__":
    # Critic input dim = resnet14 fc_in_features * 2 = 64 * 2 = 128.
    dim_input, dim_output, batch = 128, 4, 8

    key = jax.random.PRNGKey(0)
    kx, kp = jax.random.split(key)
    # In the real model x is produced by the resnet14 heads; emit it there in
    # bf16 (this cast stands in for that producer-side dtype change).
    x = jax.random.normal(kx, (batch, dim_input), jnp.float32).astype(jnp.bfloat16)
    params = init_params(kp, dim_input, dim_output)

    act_dtype = _default_act_dtype()
    out = ratio_critic_forward(x, params, dim_output, act_dtype=act_dtype)
    out = jax.block_until_ready(out)

    ref = reference_forward(x, params, dim_output, act_dtype=act_dtype,
                            out_dtype=out.dtype)
    assert out.shape == (batch, dim_output)
    assert jnp.allclose(out.astype(jnp.float32), ref.astype(jnp.float32),
                        atol=2e-2, rtol=2e-2)

    print("KERNEL_OK")
</pallas_src>

<mosaic_0001>
module attributes {stable_mosaic.version = 11 : i64} {
  func.func @ratio_critic_kernel(%arg0: i32, %arg1: memref<16x128xbf16, #tpu.memory_space<vmem>>, %arg2: memref<128x512xbf16, #tpu.memory_space<vmem>>, %arg3: memref<1x512xf32, #tpu.memory_space<vmem>>, %arg4: memref<512x128xbf16, #tpu.memory_space<vmem>>, %arg5: memref<1x128xf32, #tpu.memory_space<vmem>>, %arg6: memref<128x128xbf16, #tpu.memory_space<vmem>>, %arg7: memref<1x128xf32, #tpu.memory_space<vmem>>, %arg8: memref<16x128xbf16, #tpu.memory_space<vmem>>) attributes {dimension_semantics = [#tpu.dimension_semantics<parallel>], iteration_bounds = array<i64: 1>, scalar_prefetch = 0 : i64, scratch_operands = 0 : i64, tpu.core_type = #tpu.core_type<tc>, window_params = [{transform_indices = @transform_0, window_bounds = array<i64: 16, 128>}, {pipeline_mode = #tpu.pipeline_mode<synchronous>, transform_indices = @transform_1, window_bounds = array<i64: 128, 512>}, {pipeline_mode = #tpu.pipeline_mode<synchronous>, transform_indices = @transform_2, window_bounds = array<i64: 1, 512>}, {pipeline_mode = #tpu.pipeline_mode<synchronous>, transform_indices = @transform_3, window_bounds = array<i64: 512, 128>}, {pipeline_mode = #tpu.pipeline_mode<synchronous>, transform_indices = @transform_4, window_bounds = array<i64: 1, 128>}, {pipeline_mode = #tpu.pipeline_mode<synchronous>, transform_indices = @transform_5, window_bounds = array<i64: 128, 128>}, {pipeline_mode = #tpu.pipeline_mode<synchronous>, transform_indices = @transform_6, window_bounds = array<i64: 1, 128>}, {transform_indices = @transform_7, window_bounds = array<i64: 16, 128>}]} {
    %c0 = arith.constant 0 : index
    %c0_0 = arith.constant 0 : index
    %0 = vector.load %arg1[%c0, %c0_0] : memref<16x128xbf16, #tpu.memory_space<vmem>>, vector<16x128xbf16>
    %c0_1 = arith.constant 0 : index
    %c0_2 = arith.constant 0 : index
    %1 = vector.load %arg2[%c0_1, %c0_2] : memref<128x512xbf16, #tpu.memory_space<vmem>>, vector<128x512xbf16>
    %cst = arith.constant dense<0.000000e+00> : vector<16x512xf32>
    %2 = tpu.matmul %0, %1, %cst {dimension_numbers = #tpu.dot_dimension_numbers<[1], [0], [0], [1], [0, 0, 1, 1], [], []>} : vector<16x128xbf16>, vector<128x512xbf16>, vector<16x512xf32> -> vector<16x512xf32>
    %c0_3 = arith.constant 0 : index
    %c0_4 = arith.constant 0 : index
    %3 = vector.load %arg3[%c0_3, %c0_4] : memref<1x512xf32, #tpu.memory_space<vmem>>, vector<1x512xf32>
    %4 = vector.broadcast %3 : vector<1x512xf32> to vector<16x512xf32>
    %5 = arith.addf %2, %4 : vector<16x512xf32>
    %cst_5 = arith.constant 2.000000e+01 : f32
    %6 = vector.broadcast %cst_5 : f32 to vector<16x512xf32>
    %7 = arith.minimumf %5, %6 : vector<16x512xf32>
    %cst_6 = arith.constant 2.000000e+01 : f32
    %8 = vector.broadcast %cst_6 : f32 to vector<16x512xf32>
    %9 = arith.cmpf ogt, %5, %8 : vector<16x512xf32>
    %10 = math.exp %7 : vector<16x512xf32>
    %11 = math.log1p %10 : vector<16x512xf32>
    %12 = arith.select %9, %5, %11 : vector<16x512xi1>, vector<16x512xf32>
    %13 = arith.truncf %12 : vector<16x512xf32> to vector<16x512xbf16>
    %c0_7 = arith.constant 0 : index
    %c0_8 = arith.constant 0 : index
    %14 = vector.load %arg4[%c0_7, %c0_8] : memref<512x128xbf16, #tpu.memory_space<vmem>>, vector<512x128xbf16>
    %cst_9 = arith.constant dense<0.000000e+00> : vector<16x128xf32>
    %15 = tpu.matmul %13, %14, %cst_9 {dimension_numbers = #tpu.dot_dimension_numbers<[1], [0], [0], [1], [0, 0, 1, 1], [], []>} : vector<16x512xbf16>, vector<512x128xbf16>, vector<16x128xf32> -> vector<16x128xf32>
    %c0_10 = arith.constant 0 : index
    %c0_11 = arith.constant 0 : index
    %16 = vector.load %arg5[%c0_10, %c0_11] : memref<1x128xf32, #tpu.memory_space<vmem>>, vector<1x128xf32>
    %17 = vector.broadcast %16 : vector<1x128xf32> to vector<16x128xf32>
    %18 = arith.addf %15, %17 : vector<16x128xf32>
    %cst_12 = arith.constant 2.000000e+01 : f32
    %19 = vector.broadcast %cst_12 : f32 to vector<16x128xf32>
    %20 = arith.minimumf %18, %19 : vector<16x128xf32>
    %cst_13 = arith.constant 2.000000e+01 : f32
    %21 = vector.broadcast %cst_13 : f32 to vector<16x128xf32>
    %22 = arith.cmpf ogt, %18, %21 : vector<16x128xf32>
    %23 = math.exp %20 : vector<16x128xf32>
    %24 = math.log1p %23 : vector<16x128xf32>
    %25 = arith.select %22, %18, %24 : vector<16x128xi1>, vector<16x128xf32>
    %26 = arith.truncf %25 : vector<16x128xf32> to vector<16x128xbf16>
    %c0_14 = arith.constant 0 : index
    %c0_15 = arith.constant 0 : index
    %27 = vector.load %arg6[%c0_14, %c0_15] : memref<128x128xbf16, #tpu.memory_space<vmem>>, vector<128x128xbf16>
    %cst_16 = arith.constant dense<0.000000e+00> : vector<16x128xf32>
    %28 = tpu.matmul %26, %27, %cst_16 {dimension_numbers = #tpu.dot_dimension_numbers<[1], [0], [0], [1], [0, 0, 1, 1], [], []>} : vector<16x128xbf16>, vector<128x128xbf16>, vector<16x128xf32> -> vector<16x128xf32>
    %c0_17 = arith.constant 0 : index
    %c0_18 = arith.constant 0 : index
    %29 = vector.load %arg7[%c0_17, %c0_18] : memref<1x128xf32, #tpu.memory_space<vmem>>, vector<1x128xf32>
    %30 = vector.broadcast %29 : vector<1x128xf32> to vector<16x128xf32>
    %31 = arith.addf %28, %30 : vector<16x128xf32>
    %32 = arith.truncf %31 : vector<16x128xf32> to vector<16x128xbf16>
    %c0_19 = arith.constant 0 : index
    %c0_20 = arith.constant 0 : index
    %33 = vector.load %arg8[%c0_19, %c0_20] : memref<16x128xbf16, #tpu.memory_space<vmem>>, vector<16x128xbf16>
    tpu.vector_store %arg8[%c0_19, %c0_20], %32 {strides = array<i32>} : memref<16x128xbf16, #tpu.memory_space<vmem>>, vector<16x128xbf16>,
    return
  }
  func.func @transform_0(%arg0: i32) -> (i32, i32) {
    %c0_i32 = arith.constant 0 : i32
    %c0_i32_0 = arith.constant 0 : i32
    return %arg0, %c0_i32 : i32, i32
  }
  func.func @transform_1(%arg0: i32) -> (i32, i32) {
    %c0_i32 = arith.constant 0 : i32
    %c0_i32_0 = arith.constant 0 : i32
    %c0_i32_1 = arith.constant 0 : i32
    return %c0_i32, %c0_i32_0 : i32, i32
  }
  func.func @transform_2(%arg0: i32) -> (i32, i32) {
    %c0_i32 = arith.constant 0 : i32
    %c0_i32_0 = arith.constant 0 : i32
    %c0_i32_1 = arith.constant 0 : i32
    return %c0_i32, %c0_i32_0 : i32, i32
  }
  func.func @transform_3(%arg0: i32) -> (i32, i32) {
    %c0_i32 = arith.constant 0 : i32
    %c0_i32_0 = arith.constant 0 : i32
    %c0_i32_1 = arith.constant 0 : i32
    return %c0_i32, %c0_i32_0 : i32, i32
  }
  func.func @transform_4(%arg0: i32) -> (i32, i32) {
    %c0_i32 = arith.constant 0 : i32
    %c0_i32_0 = arith.constant 0 : i32
    %c0_i32_1 = arith.constant 0 : i32
    return %c0_i32, %c0_i32_0 : i32, i32
  }
  func.func @transform_5(%arg0: i32) -> (i32, i32) {
    %c0_i32 = arith.constant 0 : i32
    %c0_i32_0 = arith.constant 0 : i32
    %c0_i32_1 = arith.constant 0 : i32
    return %c0_i32, %c0_i32_0 : i32, i32
  }
  func.func @transform_6(%arg0: i32) -> (i32, i32) {
    %c0_i32 = arith.constant 0 : i32
    %c0_i32_0 = arith.constant 0 : i32
    %c0_i32_1 = arith.constant 0 : i32
    return %c0_i32, %c0_i32_0 : i32, i32
  }
  func.func @transform_7(%arg0: i32) -> (i32, i32) {
    %c0_i32 = arith.constant 0 : i32
    %c0_i32_0 = arith.constant 0 : i32
    return %arg0, %c0_i32 : i32, i32
  }
}

</mosaic_0001>

<bundles_post_ra>
// kernel: tpu_custom_call.1
= control target key start
LH: loop header
LB: loop body
LE: loop exit
PB: predicated region body
PF: predicated region fallthrough
CT: control target
= control target key end

     0   :  { %12 = vsyncpa [#allocation3], 0  ;;  %s1674_s0 = inlined_call_operand.hbm [shape: bf16[16,128], index: 0, kind: input, shape index: {}]   ;;  %s1675_s1 = inlined_call_operand.hbm [shape: bf16[128,512], index: 1, kind: input, shape index: {}]   ;;  %s1676_s2 = inlined_call_operand.vmem [shape: f32[1,512], index: 2, kind: input, shape index: {}]   ;;  %s1677_s3 = inlined_call_operand.hbm [shape: bf16[512,128], index: 3, kind: input, shape index: {}]   ;;  %s1678_s4 = inlined_call_operand.vmem [shape: f32[1,128], index: 4, kind: input, shape index: {}]   ;;  %s1679_s5 = inlined_call_operand.hbm [shape: bf16[128,128], index: 5, kind: input, shape index: {}]   ;;  %s1680_s6 = inlined_call_operand.vmem [shape: f32[1,128], index: 6, kind: input, shape index: {}]   ;;  %s1681_s7 = inlined_call_operand.hbm [shape: bf16[16,128], index: 7, kind: output, shape index: {}]  }
   0x1   :  { %13 = vsyncpa [#allocation6], 0 }
   0x2   :  { %14 = vsyncpa [#allocation9], 0 }
   0x3   :  { %15 = vsyncpa [#allocation4], 0  ;;  %s1438_s24 = smov [#allocation5]   ;;  %s1320_s28 = scalar_lea.hbm %s1675_s1, 4096 }
   0x4   :  { %s33_s25 = sshll.u32 %s1438_s24, 4  ;;  %p1321_p0 = scmp.ne.s32.totalorder %s1675_s1, %s1320_s28  ;;  %s34_s25 = int_to_ptr.vmem [resolvable:$true] %s33_s25 }
   0x5   :  { %p1324_p1 = scmp.lt.u32.totalorder %s1320_s28, %s1675_s1 }
   0x7   :  { %p1326_p2 = pnand %p1324_p1, %p1321_p0 }
   0x9   :  { %1329 = shalt.err (!%p1326_p2)
}
   0xa   :  { %s1330_s10 = scalar_lea.vmem %s34_s25, 4096  ;;  %p1335_p4 = scmp.lt.s32.totalorder %s34_s25, %s34_s25 }
   0xb   :  { %p1331_p3 = scmp.ne.s32.totalorder %s34_s25, %s1330_s10  ;;  %p1336_p5 = scmp.lt.s32.totalorder %s1330_s10, %s1330_s10 }
   0xd   :  { %p1337_p6 = por %p1336_p5, %p1335_p4 }
   0xf   :  { %p1338_p7 = pnand %p1337_p6, %p1331_p3 }
  0x11   :  { %1341 = shalt.err (!%p1338_p7)
}
  0x12   :  { %s1439_s11 = smov 256   ;;  %s1440_s12 = smov 16  }
  0x13   :  { %39 = dma.hbm_to_vmem [thread:$0]  %s1675_s1, 4096, %s34_s25, [#allocation6], %s1439_s11, %s1439_s11, %s1440_s12  }
  0x14   :  { %s1441_s15 = smov [#allocation2]   ;;  %s1342_s19 = scalar_lea.hbm %s1674_s0, 128 }
  0x15   :  { %s21_s16 = sshll.u32 %s1441_s15, 4  ;;  %p1343_p8 = scmp.ne.s32.totalorder %s1674_s0, %s1342_s19  ;;  %s22_s16 = int_to_ptr.vmem [resolvable:$true] %s21_s16 }
  0x16   :  { %p1346_p9 = scmp.lt.u32.totalorder %s1342_s19, %s1674_s0 }
  0x18   :  { %p1348_p10 = pnand %p1346_p9, %p1343_p8 }
  0x1a   :  { %1351 = shalt.err (!%p1348_p10)
}
  0x1b   :  { %s1352_s24 = scalar_lea.vmem %s22_s16, 128  ;;  %p1357_p12 = scmp.lt.s32.totalorder %s22_s16, %s22_s16 }
  0x1c   :  { %p1353_p11 = scmp.ne.s32.totalorder %s22_s16, %s1352_s24  ;;  %p1358_p13 = scmp.lt.s32.totalorder %s1352_s24, %s1352_s24 }
  0x1e   :  { %p1359_p0 = por %p1358_p13, %p1357_p12 }
  0x20   :  { %p1360_p1 = pnand %p1359_p0, %p1353_p11 }
  0x22   :  { %1363 = shalt.err (!%p1360_p1)
}
  0x23   :  { %s1442_s1 = smov 64   ;;  %s1443_s25 = smov 4  }
  0x24   :  { %27 = dma.hbm_to_vmem [thread:$0]  %s1674_s0, 128, %s22_s16, [#allocation3], %s1442_s1, %s1442_s1, %s1443_s25  }
  0x25   :  { %s1444_s28 = smov [#allocation7]   ;;  %s1445_s30 = smov [#allocation8]  }
  0x26   :  { %s47_s29 = sshll.u32 %s1444_s28, 4  ;;  %s61_s8 = sshll.u32 %s1445_s30, 4  ;;  %s48_s29 = int_to_ptr.vmem [resolvable:$true] %s47_s29  ;;  %s1517_s8 = int_to_ptr.vmem [resolvable:$true] %s61_s8 }
  0x27   :  { %s1364_s11 = scalar_lea.hbm %s1677_s3, 4096 }
  0x28   :  { %p1365_p2 = scmp.ne.s32.totalorder %s1677_s3, %s1364_s11  ;;  %p1368_p3 = scmp.lt.u32.totalorder %s1364_s11, %s1677_s3 }
  0x2a   :  { %p1370_p4 = pnand %p1368_p3, %p1365_p2 }
  0x2c   :  { %1373 = shalt.err (!%p1370_p4)
}
  0x2d   :  { %s1374_s0 = scalar_lea.vmem %s48_s29, 4096  ;;  %p1379_p6 = scmp.lt.s32.totalorder %s48_s29, %s48_s29 }
  0x2e   :  { %p1375_p5 = scmp.ne.s32.totalorder %s48_s29, %s1374_s0  ;;  %p1380_p7 = scmp.lt.s32.totalorder %s1374_s0, %s1374_s0 }
  0x30   :  { %p1381_p8 = por %p1380_p7, %p1379_p6 }
  0x32   :  { %p1382_p9 = pnand %p1381_p8, %p1375_p5 }
  0x34   :  { %1385 = shalt.err (!%p1382_p9)
}
  0x35   :  { %53 = dma.hbm_to_vmem [thread:$0]  %s1677_s3, 4096, %s48_s29, [#allocation6], %s1442_s1, %s1442_s1, %s1443_s25  }
  0x36   :  { %s1386_s20 = scalar_lea.hbm %s1679_s5, 1024 }
  0x37   :  { %p1387_p10 = scmp.ne.s32.totalorder %s1679_s5, %s1386_s20  ;;  %p1390_p11 = scmp.lt.u32.totalorder %s1386_s20, %s1679_s5 }
  0x39   :  { %p1392_p12 = pnand %p1390_p11, %p1387_p10 }
  0x3b   :  { %1395 = shalt.err (!%p1392_p12)
}
  0x3c   :  { %s1396_s26 = scalar_lea.vmem %s1517_s8, 1024  ;;  %p1401_p0 = scmp.lt.s32.totalorder %s1517_s8, %s1517_s8 }
  0x3d   :  { %p1397_p13 = scmp.ne.s32.totalorder %s1517_s8, %s1396_s26  ;;  %p1402_p1 = scmp.lt.s32.totalorder %s1396_s26, %s1396_s26 }
  0x3f   :  { %p1403_p2 = por %p1402_p1, %p1401_p0 }
  0x41   :  { %p1404_p3 = pnand %p1403_p2, %p1397_p13 }
  0x43   :  { %1407 = shalt.err (!%p1404_p3)
}
  0x44   :  { %67 = dma.hbm_to_vmem [thread:$0]  %s1679_s5, 1024, %s1517_s8, [#allocation9], %s1442_s1, %s1442_s1, %s1443_s25  }
  0x45   :  { %1430 = dma.done.wait [#allocation3], 128  }
  0x46   :  { %1431 = vsyncadd [#allocation3], 4294967168 }
  0x47   :  { %1432 = dma.done.wait [#allocation6], 8192  }
  0x48   :  { %1433 = vsyncadd [#allocation6], 4294959104 }
  0x49   :  { %1434 = dma.done.wait [#allocation9], 1024  }
  0x4a   :  { %1435 = vsyncadd [#allocation9], 4294966272  ;;  %v1446_v0 = vmov 0   ;;  %v1191_v1 = vld [vmem:[#allocation5 + $0x4] ss:$16 sps:$4 sm:$0xff]   ;;  %v1239_v33 = vld [vmem:[#allocation2] sm:$0xff]  }
  0x4b   :  { %337 = vmatprep.mubr.bf16.mxu0 %v1446_v0  ;;  %380 = vmatprep.mubr.bf16.mxu1 %v1446_v0  ;;  %v1193_v2 = vld [vmem:[#allocation5 + $0xc] ss:$16 sps:$4 sm:$0xff]   ;;  %v1195_v3 = vld [vmem:[#allocation5] ss:$16 sps:$4 sm:$0xff]   ;;  %v1196_v4 = vld [vmem:[#allocation5 + $0x8] ss:$16 sps:$4 sm:$0xff]  }
  0x4c   :  { %305 = vmatprep.subr.bf16.mxu0 %v1191_v1  ;;  %348 = vmatprep.subr.bf16.mxu1 %v1193_v2  ;;  %v1197_v5 = vld [vmem:[#allocation5 + $0x24] ss:$16 sps:$4 sm:$0xff]   ;;  %v1199_v6 = vld [vmem:[#allocation5 + $0x2c] ss:$16 sps:$4 sm:$0xff]   ;;  %v1201_v7 = vld [vmem:[#allocation5 + $0x20] ss:$16 sps:$4 sm:$0xff]   ;;  %v119_v2 = vlaneseq }
  0x4d   :  { %306 = vmatpush1.bf16.msra.mxu0 %v1195_v3  ;;  %349 = vmatpush1.bf16.msra.mxu1 %v1196_v4  ;;  %v1202_v8 = vld [vmem:[#allocation5 + $0x28] ss:$16 sps:$4 sm:$0xff]   ;;  %v1203_v9 = vld [vmem:[#allocation5 + $0x44] ss:$16 sps:$4 sm:$0xff]   ;;  %v1205_v10 = vld [vmem:[#allocation5 + $0x4c] ss:$16 sps:$4 sm:$0xff]  }
  0x4e   :  { %307 = vmatprep.subr.bf16.mxu0 %v1197_v5  ;;  %350 = vmatprep.subr.bf16.mxu1 %v1199_v6  ;;  %v1207_v11 = vld [vmem:[#allocation5 + $0x40] ss:$16 sps:$4 sm:$0xff]   ;;  %v1208_v12 = vld [vmem:[#allocation5 + $0x48] ss:$16 sps:$4 sm:$0xff]   ;;  %v1209_v13 = vld [vmem:[#allocation5 + $0x64] ss:$16 sps:$4 sm:$0xff]  }
  0x4f   :  { %v1211_v14 = vld [vmem:[#allocation5 + $0x6c] ss:$16 sps:$4 sm:$0xff]   ;;  %v1213_v15 = vld [vmem:[#allocation5 + $0x60] ss:$16 sps:$4 sm:$0xff]   ;;  %v1214_v16 = vld [vmem:[#allocation5 + $0x68] ss:$16 sps:$4 sm:$0xff]  }
  0x50   :  { %v1215_v17 = vld [vmem:[#allocation5 + $0x84] ss:$16 sps:$4 sm:$0xff]   ;;  %v1217_v18 = vld [vmem:[#allocation5 + $0x8c] ss:$16 sps:$4 sm:$0xff]   ;;  %v1219_v19 = vld [vmem:[#allocation5 + $0x80] ss:$16 sps:$4 sm:$0xff]  }
  0x51   :  { %308 = vmatpush1.bf16.msra.mxu0 %v1201_v7  ;;  %351 = vmatpush1.bf16.msra.mxu1 %v1202_v8  ;;  %v1220_v20 = vld [vmem:[#allocation5 + $0x88] ss:$16 sps:$4 sm:$0xff]   ;;  %v1221_v21 = vld [vmem:[#allocation5 + $0xa4] ss:$16 sps:$4 sm:$0xff]   ;;  %v1223_v22 = vld [vmem:[#allocation5 + $0xac] ss:$16 sps:$4 sm:$0xff]  }
  0x52   :  { %309 = vmatprep.subr.bf16.mxu0 %v1203_v9  ;;  %352 = vmatprep.subr.bf16.mxu1 %v1205_v10  ;;  %v1225_v23 = vld [vmem:[#allocation5 + $0xa0] ss:$16 sps:$4 sm:$0xff]   ;;  %v1226_v24 = vld [vmem:[#allocation5 + $0xa8] ss:$16 sps:$4 sm:$0xff]   ;;  %v1227_v25 = vld [vmem:[#allocation5 + $0xc4] ss:$16 sps:$4 sm:$0xff]  }
  0x53   :  { %v1229_v26 = vld [vmem:[#allocation5 + $0xcc] ss:$16 sps:$4 sm:$0xff]   ;;  %v1231_v27 = vld [vmem:[#allocation5 + $0xc0] ss:$16 sps:$4 sm:$0xff]   ;;  %v1232_v28 = vld [vmem:[#allocation5 + $0xc8] ss:$16 sps:$4 sm:$0xff]  }
  0x54   :  { %v1233_v29 = vld [vmem:[#allocation5 + $0xe4] ss:$16 sps:$4 sm:$0xff]   ;;  %v1235_v30 = vld [vmem:[#allocation5 + $0xec] ss:$16 sps:$4 sm:$0xff]   ;;  %v1237_v31 = vld [vmem:[#allocation5 + $0xe0] ss:$16 sps:$4 sm:$0xff]  }
  0x55   :  { %310 = vmatpush1.bf16.msra.mxu0 %v1207_v11  ;;  %353 = vmatpush1.bf16.msra.mxu1 %v1208_v12  ;;  %v1238_v32 = vld [vmem:[#allocation5 + $0xe8] ss:$16 sps:$4 sm:$0xff]   ;;  %v1240_v34 = vld [vmem:[#allocation7 + $0x40] sm:$0xff]   ;;  %v1248_v42 = vld [vmem:[#allocation7 + $0x50] sm:$0xff]   ;;  %v120_v3 = vshrl.u32 %v119_v2, 7  ;;  %s1449_s8 = smov [#allocation10]  }
  0x56   :  { %311 = vmatprep.subr.bf16.mxu0 %v1209_v13  ;;  %354 = vmatprep.subr.bf16.mxu1 %v1211_v14  ;;  %v1241_v35 = vld [vmem:[#allocation7 + $0xc0] sm:$0xff]   ;;  %v1244_v38 = vld [vmem:[#allocation7 + $0x48] sm:$0xff]   ;;  %v1249_v43 = vld [vmem:[#allocation7 + $0xd0] sm:$0xff]   ;;  %s1008_s9 = sshll.u32 %s1449_s8, 4  ;;  %s1009_s9 = int_to_ptr.vmem [resolvable:$true] %s1008_s9 }
  0x57   :  { %v1242_v36 = vld [vmem:[#allocation7] sm:$0xff]   ;;  %v1245_v39 = vld [vmem:[#allocation7 + $0xc8] sm:$0xff]   ;;  %v1250_v44 = vld [vmem:[#allocation7 + $0x10] sm:$0xff]   ;;  %v121_v4 = vsub.s32 0, %v120_v3  ;;  %v129_v5 = vsub.s32 2, %v120_v3  ;;  %v125_v7 = vsub.s32 1, %v120_v3  ;;  %p1413_p5 = scmp.lt.s32.totalorder %s1009_s9, %s1009_s9 }
  0x58   :  { %v1243_v37 = vld [vmem:[#allocation7 + $0x80] sm:$0xff]   ;;  %v1246_v40 = vld [vmem:[#allocation7 + $0x8] sm:$0xff]   ;;  %v1251_v45 = vld [vmem:[#allocation7 + $0x90] sm:$0xff]   ;;  %v133_v8 = vsub.s32 3, %v120_v3  ;;  %s1408_s10 = scalar_lea.vmem %s1009_s9, 128 }
  0x59   :  { %312 = vmatpush1.bf16.msra.mxu0 %v1213_v15  ;;  %355 = vmatpush1.bf16.msra.mxu1 %v1214_v16  ;;  %v1247_v41 = vld [vmem:[#allocation7 + $0x88] sm:$0xff]   ;;  %v1252_v46 = vld [vmem:[#allocation7 + $0x58] sm:$0xff]   ;;  %v1256_v50 = vld [vmem:[#allocation7 + $0x60] sm:$0xff]   ;;  %p1409_p4 = scmp.ne.s32.totalorder %s1009_s9, %s1408_s10  ;;  %p1414_p6 = scmp.lt.s32.totalorder %s1408_s10, %s1408_s10 }
  0x5a   :  { %313 = vmatprep.subr.bf16.mxu0 %v1215_v17  ;;  %356 = vmatprep.subr.bf16.mxu1 %v1217_v18  ;;  %v1253_v47 = vld [vmem:[#allocation7 + $0xd8] sm:$0xff]   ;;  %v1257_v51 = vld [vmem:[#allocation7 + $0xe0] sm:$0xff]   ;;  %v1260_v54 = vld [vmem:[#allocation7 + $0x68] sm:$0xff]  }
  0x5b   :  { %v1254_v48 = vld [vmem:[#allocation7 + $0x18] sm:$0xff]   ;;  %v1258_v52 = vld [vmem:[#allocation7 + $0x20] sm:$0xff]   ;;  %v1261_v55 = vld [vmem:[#allocation7 + $0xe8] sm:$0xff]   ;;  %p1415_p7 = por %p1414_p6, %p1413_p5 }
  0x5c   :  { %v1255_v49 = vld [vmem:[#allocation7 + $0x98] sm:$0xff]   ;;  %v1259_v53 = vld [vmem:[#allocation7 + $0xa0] sm:$0xff]   ;;  %v1262_v56 = vld [vmem:[#allocation7 + $0x28] sm:$0xff]  }
  0x5d   :  { %314 = vmatpush1.bf16.msra.mxu0 %v1219_v19  ;;  %357 = vmatpush1.bf16.msra.mxu1 %v1220_v20  ;;  %v1263_v57 = vld [vmem:[#allocation7 + $0xa8] sm:$0xff]   ;;  %v1264_v58 = vld [vmem:[#allocation7 + $0x70] sm:$0xff]   ;;  %v1268_v62 = vld [vmem:[#allocation7 + $0x78] sm:$0xff]   ;;  %p1416_p8 = pnand %p1415_p7, %p1409_p4 }
  0x5e   :  { %315 = vmatprep.subr.bf16.mxu0 %v1221_v21  ;;  %358 = vmatprep.subr.bf16.mxu1 %v1223_v22  ;;  %v1265_v59 = vld [vmem:[#allocation7 + $0xf0] sm:$0xff]   ;;  %v1269_v63 = vld [vmem:[#allocation7 + $0xf8] sm:$0xff]  }
  0x5f   :  { %v1266_v60 = vld [vmem:[#allocation7 + $0x30] sm:$0xff]   ;;  %v1270_v0 = vld [vmem:[#allocation7 + $0x38] sm:$0xff]  }
  0x60   :  { %v1267_v61 = vld [vmem:[#allocation7 + $0xb0] sm:$0xff]   ;;  %v1271_v1 = vld [vmem:[#allocation7 + $0xb8] sm:$0xff]  }
  0x61   :  { %316 = vmatpush1.bf16.msra.mxu0 %v1225_v23  ;;  %359 = vmatpush1.bf16.msra.mxu1 %v1226_v24  ;;  %v117_v6 = vld [vmem:[%s1676_s2] sm:$0xf] }
  0x62   :  { %317 = vmatprep.subr.bf16.mxu0 %v1227_v25  ;;  %360 = vmatprep.subr.bf16.mxu1 %v1229_v26  ;;  %v122_v9 = vrot.slane %v117_v6, %v121_v4  ;;  %v130_v10 = vrot.slane %v117_v6, %v129_v5  ;;  %v126_v11 = vrot.slane %v117_v6, %v125_v7 }
  0x63   :  { %v134_v12 = vrot.slane %v117_v6, %v133_v8 }
  0x65   :  { %318 = vmatpush1.bf16.msra.mxu0 %v1231_v27  ;;  %361 = vmatpush1.bf16.msra.mxu1 %v1232_v28 }
  0x66   :  { %319 = vmatprep.subr.bf16.mxu0 %v1233_v29  ;;  %362 = vmatprep.subr.bf16.mxu1 %v1235_v30 }
  0x69   :  { %320 = vmatpush1.bf16.msra.mxu0 %v1237_v31  ;;  %363 = vmatpush1.bf16.msra.mxu1 %v1238_v32 }
  0x6a   :  { %1106 = vmatprep.subr.bf16.mxu0 %v1240_v34  ;;  %1128 = vmatprep.subr.bf16.mxu1 %v1241_v35 }
  0x6c   :  { %338 = vmatmul.mubr.bf16.vlgmr.msra.gmra.mrb[0].mxu0 %v1239_v33  ;;  %381 = vmatmul.mubr.bf16.vlgmr.msra.gmra.mrb[0].mxu1 %v1239_v33 }
  0x6d   :  { %1107 = vmatpush3.bf16.msra.mxu0 %v1242_v36  ;;  %1129 = vmatpush3.bf16.msra.mxu1 %v1243_v37 }
  0x6e   :  { %1108 = vmatprep.subr.bf16.mxu0 %v1244_v38  ;;  %1130 = vmatprep.subr.bf16.mxu1 %v1245_v39 }
  0x71   :  { %1109 = vmatpush3.bf16.msra.mxu0 %v1246_v40  ;;  %1131 = vmatpush3.bf16.msra.mxu1 %v1247_v41 }
  0x72   :  { %1110 = vmatprep.subr.bf16.mxu0 %v1248_v42  ;;  %1132 = vmatprep.subr.bf16.mxu1 %v1249_v43 }
  0x75   :  { %1111 = vmatpush3.bf16.msra.mxu0 %v1250_v44  ;;  %1133 = vmatpush3.bf16.msra.mxu1 %v1251_v45 }
  0x76   :  { %1112 = vmatprep.subr.bf16.mxu0 %v1252_v46  ;;  %1134 = vmatprep.subr.bf16.mxu1 %v1253_v47 }
  0x79   :  { %1113 = vmatpush3.bf16.msra.mxu0 %v1254_v48  ;;  %1135 = vmatpush3.bf16.msra.mxu1 %v1255_v49 }
  0x7a   :  { %1114 = vmatprep.subr.bf16.mxu0 %v1256_v50  ;;  %1136 = vmatprep.subr.bf16.mxu1 %v1257_v51 }
  0x7d   :  { %1115 = vmatpush3.bf16.msra.mxu0 %v1258_v52  ;;  %1137 = vmatpush3.bf16.msra.mxu1 %v1259_v53 }
  0x7e   :  { %1116 = vmatprep.subr.bf16.mxu0 %v1260_v54  ;;  %1138 = vmatprep.subr.bf16.mxu1 %v1261_v55 }
  0x81   :  { %1117 = vmatpush3.bf16.msra.mxu0 %v1262_v56  ;;  %1139 = vmatpush3.bf16.msra.mxu1 %v1263_v57 }
  0x82   :  { %1118 = vmatprep.subr.bf16.mxu0 %v1264_v58  ;;  %1140 = vmatprep.subr.bf16.mxu1 %v1265_v59 }
  0x85   :  { %1119 = vmatpush3.bf16.msra.mxu0 %v1266_v60  ;;  %1141 = vmatpush3.bf16.msra.mxu1 %v1267_v61 }
  0x86   :  { %1120 = vmatprep.subr.bf16.mxu0 %v1268_v62  ;;  %1142 = vmatprep.subr.bf16.mxu1 %v1269_v63 }
  0x89   :  { %1121 = vmatpush3.bf16.msra.mxu0 %v1270_v0  ;;  %1143 = vmatpush3.bf16.msra.mxu1 %v1271_v1 }
 0x13f   :  { %v339_v13 = vpop.f32.mrb[0].mxu0  ;;  %v382_v14 = vpop.f32.mrb[0].mxu1 }
 0x140   :  { %v1557_v15 = vadd.f32 %v339_v13, %v122_v9  ;;  %v1559_v16 = vadd.f32 %v382_v14, %v130_v10  ;;  %v341_v17 = vpop.f32.mrb[1].mxu0  ;;  %v384_v18 = vpop.f32.mrb[1].mxu1 }
 0x141   :  { %v1561_v19 = vadd.f32 %v341_v17, %v126_v11  ;;  %v343_v20 = vpop.f32.mrb[2].mxu0  ;;  %v386_v21 = vpop.f32.mrb[2].mxu1  ;;  %v1565_v24 = vadd.f32 %v384_v18, %v134_v12 }
 0x142   :  { %v391_v22 = vmin.f32 %v1557_v15, 20.0  ;;  %v393_v23 = vmin.f32 %v1559_v16, 20.0  ;;  %v345_v25 = vpop.f32.mrb[3].mxu0  ;;  %v388_v26 = vpop.f32.mrb[3].mxu1  ;;  %v1568_v30 = vadd.f32 %v343_v20, %v122_v9  ;;  %v1570_v31 = vadd.f32 %v386_v21, %v130_v10 }
 0x143   :  { %v392_v27 = vmin.f32 %v1561_v19, 20.0  ;;  %v1572_v33 = vadd.f32 %v345_v25, %v126_v11  ;;  %v1574_v34 = vadd.f32 %v388_v26, %v134_v12  ;;  %v394_v35 = vmin.f32 %v1565_v24, 20.0 }
 0x144   :  { %v407_v28 = vmul.f32 1.442695, %v391_v22  ;;  %v411_v29 = vmul.f32 1.442695, %v393_v23  ;;  %v395_v36 = vmin.f32 %v1568_v30, 20.0  ;;  %v397_v37 = vmin.f32 %v1570_v31, 20.0 }
 0x145   :  { %v409_v32 = vmul.f32 1.442695, %v392_v27  ;;  %v396_v38 = vmin.f32 %v1572_v33, 20.0  ;;  %v398_v41 = vmin.f32 %v1574_v34, 20.0  ;;  %v413_v43 = vmul.f32 1.442695, %v394_v35 }
 0x146   :  { %1280 = vpow2.f32 %v407_v28  ;;  %v415_v39 = vmul.f32 1.442695, %v395_v36  ;;  %v419_v40 = vmul.f32 1.442695, %v397_v37  ;;  %vm399_vm1 = vcmp.gt.f32.partialorder %v1557_v15, 20.0 }
 0x147   :  { %1282 = vpow2.f32 %v411_v29  ;;  %v417_v42 = vmul.f32 1.442695, %v396_v38  ;;  %v421_v44 = vmul.f32 1.442695, %v398_v41  ;;  %vm401_vm2 = vcmp.gt.f32.partialorder %v1559_v16, 20.0 }
 0x148   :  { %1284 = vpow2.f32 %v409_v32  ;;  %vm403_vm3 = vcmp.gt.f32.partialorder %v1568_v30, 20.0  ;;  %vm405_vm4 = vcmp.gt.f32.partialorder %v1570_v31, 20.0  ;;  %vm400_vm9 = vcmp.gt.f32.partialorder %v1561_v19, 20.0 }
 0x149   :  { %1286 = vpow2.f32 %v415_v39  ;;  %vm404_vm10 = vcmp.gt.f32.partialorder %v1572_v33, 20.0  ;;  %vm402_vm14 = vcmp.gt.f32.partialorder %v1565_v24, 20.0  ;;  %vm406_vm15 = vcmp.gt.f32.partialorder %v1574_v34, 20.0 }
 0x14a   :  { %1288 = vpow2.f32 %v419_v40 }
 0x14b   :  { %1290 = vpow2.f32 %v417_v42 }
 0x14c   :  { %1292 = vpow2.f32 %v413_v43 }
 0x14d   :  { %1294 = vpow2.f32 %v421_v44 }
 0x150   :  { %v1281_v45 = vpop.eup %1280 }
 0x151   :  { %v1283_v46 = vpop.eup %1282  ;;  %v423_v47 = vadd.f32 1.0, %v1281_v45  ;;  %v426_v55 = vmul.f32 -0.5, %v1281_v45  ;;  %v429_v56 = vand.u32 2147483647, %v1281_v45 }
 0x152   :  { %v1285_v48 = vpop.eup %1284  ;;  %v441_v49 = vadd.f32 1.0, %v1283_v46  ;;  %v444_v58 = vmul.f32 -0.5, %v1283_v46  ;;  %v447_v2 = vand.u32 2147483647, %v1283_v46 }
 0x153   :  { %1296 = vlog2.f32 %v423_v47  ;;  %v1287_v50 = vpop.eup %1286  ;;  %v432_v53 = vadd.f32 1.0, %v1285_v48  ;;  %v435_v62 = vmul.f32 -0.5, %v1285_v48  ;;  %v427_v0 = vadd.f32 1.0, %v426_v55 }
 0x154   :  { %1298 = vlog2.f32 %v441_v49  ;;  %v1289_v51 = vpop.eup %1288  ;;  %v459_v52 = vadd.f32 1.0, %v1287_v50  ;;  %v462_v61 = vmul.f32 -0.5, %v1287_v50  ;;  %vm1588_vm0 = vcmp.lt.f32.partialorder %v429_v56, 0.0004427343 }
 0x155   :  { %v1581_v54 = vpop.eup %1290  ;;  %v477_v57 = vadd.f32 1.0, %v1289_v51  ;;  %v445_v3 = vadd.f32 1.0, %v444_v58  ;;  %v480_v4 = vmul.f32 -0.5, %v1289_v51  ;;  %v465_v6 = vand.u32 2147483647, %v1287_v50 }
 0x156   :  { %1300 = vlog2.f32 %v459_v52  ;;  %v1583_v59 = vpop.eup %1292  ;;  %v468_v63 = vadd.f32 1.0, %v1581_v54  ;;  %v483_v7 = vand.u32 2147483647, %v1289_v51  ;;  %v471_v8 = vmul.f32 -0.5, %v1581_v54 }
 0x157   :  { %1302 = vlog2.f32 %v477_v57  ;;  %v1585_v60 = vpop.eup %1294  ;;  %v450_v5 = vadd.f32 1.0, %v1583_v59  ;;  %v463_v11 = vadd.f32 1.0, %v462_v61  ;;  %v436_v12 = vadd.f32 1.0, %v435_v62 }
 0x158   :  { %1304 = vlog2.f32 %v432_v53  ;;  %v486_v9 = vadd.f32 1.0, %v1585_v60  ;;  %v438_v13 = vand.u32 2147483647, %v1285_v48  ;;  %v428_v18 = vmul.f32 %v1281_v45, %v427_v0 }
 0x159   :  { %1306 = vlog2.f32 %v468_v63  ;;  %vm1599_vm5 = vcmp.lt.f32.partialorder %v447_v2, 0.0004427343  ;;  %v446_v22 = vmul.f32 %v1283_v46, %v445_v3  ;;  %v481_v23 = vadd.f32 1.0, %v480_v4 }
 0x15a   :  { %1308 = vlog2.f32 %v450_v5  ;;  %v453_v25 = vmul.f32 -0.5, %v1583_v59  ;;  %vm1604_vm6 = vcmp.lt.f32.partialorder %v465_v6, 0.0004427343  ;;  %vm1608_vm7 = vcmp.lt.f32.partialorder %v483_v7, 0.0004427343 }
 0x15b   :  { %1310 = vlog2.f32 %v486_v9  ;;  %v472_v28 = vadd.f32 1.0, %v471_v8  ;;  %v489_v29 = vmul.f32 -0.5, %v1585_v60  ;;  %v464_v35 = vmul.f32 %v1287_v50, %v463_v11  ;;  %v1274_v11 = vld [vmem:[#allocation8 + $0x10] sm:$0xff]  }
 0x15c   :  { %v437_v36 = vmul.f32 %v1285_v48, %v436_v12  ;;  %vm1613_vm8 = vcmp.lt.f32.partialorder %v438_v13, 0.0004427343  ;;  %v474_v38 = vand.u32 2147483647, %v1581_v54  ;;  %v456_v43 = vand.u32 2147483647, %v1583_v59 }
 0x15d   :  { %v1297_v10 = vpop.eup %1296  ;;  %v482_v46 = vmul.f32 %v1289_v51, %v481_v23  ;;  %v454_v47 = vadd.f32 1.0, %v453_v25  ;;  %v492_v48 = vand.u32 2147483647, %v1585_v60  ;;  %v473_v52 = vmul.f32 %v1581_v54, %v472_v28  ;;  %v1275_v12 = vld [vmem:[#allocation8 + $0x18] sm:$0xff]   ;;  %v1278_v13 = vld [vmem:[#allocation8 + $0x30] sm:$0xff]  }
 0x15e   :  { %v1299_v14 = vpop.eup %1298  ;;  %v425_v17 = vmul.f32 0.6931472, %v1297_v10  ;;  %v490_v53 = vadd.f32 1.0, %v489_v29  ;;  %vm475_vm11 = vcmp.lt.f32.partialorder %v474_v38, 0.0004427343 }
 0x15f   :  { %v443_v21 = vmul.f32 0.6931472, %v1299_v14  ;;  %v455_v2 = vmul.f32 %v1583_v59, %v454_v47  ;;  %vm457_vm12 = vcmp.lt.f32.partialorder %v456_v43, 0.0004427343  ;;  %vm493_vm13 = vcmp.lt.f32.partialorder %v492_v48, 0.0004427343 }
 0x160   :  { %v1301_v32 = vpop.eup %1300  ;;  %v431_v40 = vsel %vm1588_vm0, %v428_v18, %v425_v17  ;;  %v491_v5 = vmul.f32 %v1585_v60, %v490_v53  ;;  %v1273_v60 = vld [vmem:[#allocation8 + $0x8] sm:$0xff]   ;;  %v1279_v14 = vld [vmem:[#allocation8 + $0x38] sm:$0xff]   ;;  %vm1448_vm0 = vmmov 0  }
 0x161   :  { %v1303_v39 = vpop.eup %1302  ;;  %v449_v41 = vsel %vm1599_vm5, %v446_v22, %v443_v21  ;;  %v461_v42 = vmul.f32 0.6931472, %v1301_v32  ;;  %v495_v56 = vsel %vm399_vm1, %v1557_v15, %v431_v40  ;;  %v1055_v18 = vld [vmem:[%s1678_s4] ss:$0 sm:$0xff] }
 0x162   :  { %v1305_v44 = vpop.eup %1304  ;;  %v479_v45 = vmul.f32 0.6931472, %v1303_v39  ;;  %v497_v57 = vsel %vm401_vm2, %v1559_v16, %v449_v41 }
 0x163   :  { %v467_v49 = vsel %vm1604_vm6, %v464_v35, %v461_v42  ;;  %v434_v50 = vmul.f32 0.6931472, %v1305_v44  ;;  %v1307_v55 = vpop.eup %1306 }
 0x164   :  { %v499_v51 = vsel %vm403_vm3, %v1568_v30, %v467_v49  ;;  %v485_v58 = vsel %vm1608_vm7, %v482_v46, %v479_v45  ;;  %v470_v15 = vmul.f32 0.6931472, %v1307_v55  ;;  %v1309_v63 = vpop.eup %1308 }
 0x165   :  { %v503_v61 = vpack.c.bf16 %v499_v51, %v495_v56  ;;  %v501_v54 = vsel %vm405_vm4, %v1570_v31, %v485_v58  ;;  %v440_v62 = vsel %vm1613_vm8, %v437_v36, %v434_v50  ;;  %v1311_v30 = vpop.eup %1310  ;;  %v452_v1 = vmul.f32 0.6931472, %v1309_v63 }
 0x166   :  { %v505_v16 = vpack.c.bf16 %v501_v54, %v497_v57  ;;  %v476_v0 = vsel %vm475_vm11, %v473_v52, %v470_v15  ;;  %v496_v3 = vsel %vm400_vm9, %v1561_v19, %v440_v62  ;;  %v488_v4 = vmul.f32 0.6931472, %v1311_v30  ;;  %v1272_v19 = vld [vmem:[#allocation8] sm:$0xff]  }
 0x167   :  { %v500_v31 = vsel %vm404_vm10, %v1572_v33, %v476_v0  ;;  %v458_v7 = vsel %vm457_vm12, %v455_v2, %v452_v1  ;;  %v1447_v33 = vmov 0.0   ;;  %v1088_v0 = vld [vmem:[%s1680_s6] ss:$0 sm:$0xff] }
 0x168   :  { %v504_v6 = vpack.c.bf16 %v500_v31, %v496_v3  ;;  %v494_v8 = vsel %vm493_vm13, %v491_v5, %v488_v4  ;;  %v498_v9 = vsel %vm402_vm14, %v1565_v24, %v458_v7  ;;  %1159 = vmatprep.subr.bf16.mxu0 %v1447_v33  ;;  %v1276_v24 = vld [vmem:[#allocation8 + $0x20] sm:$0xff]  }
 0x169   :  { %v502_v59 = vsel %vm406_vm15, %v1574_v34, %v494_v8  ;;  %v1277_v34 = vld [vmem:[#allocation8 + $0x28] sm:$0xff]  }
 0x16a   :  { %802 = vmatprep.mubr.bf16.mxu0 %v504_v6  ;;  %v506_v10 = vpack.c.bf16 %v502_v59, %v498_v9 }
 0x16b   :  { %803 = vmatmul.mubr.bf16.vlgmr.msra.gmra.mrb[4].mxu0 %v503_v61 }
 0x16c   :  { %843 = vmatprep.mubr.bf16.mxu1 %v506_v10  ;;  %1160 = vmatpush3.bf16.msra.mxu0 %v1272_v19 }
 0x16d   :  { %844 = vmatmul.mubr.bf16.vlgmr.msra.gmra.mrb[4].mxu1 %v505_v16  ;;  %1161 = vmatprep.subr.bf16.mxu0 %v1447_v33 }
 0x16e   :  { %1175 = vmatprep.mubr.msk.bf16.mxu0 %vm1448_vm0, %v1447_v33 }
 0x170   :  { %1162 = vmatpush3.bf16.msra.mxu0 %v1273_v60 }
 0x171   :  { %1163 = vmatprep.subr.bf16.mxu0 %v1447_v33 }
 0x174   :  { %1164 = vmatpush3.bf16.msra.mxu0 %v1274_v11 }
 0x175   :  { %1165 = vmatprep.subr.bf16.mxu0 %v1447_v33 }
 0x178   :  { %1166 = vmatpush3.bf16.msra.mxu0 %v1275_v12 }
 0x179   :  { %1167 = vmatprep.subr.bf16.mxu0 %v1447_v33 }
 0x17c   :  { %1168 = vmatpush3.bf16.msra.mxu0 %v1276_v24 }
 0x17d   :  { %1169 = vmatprep.subr.bf16.mxu0 %v1447_v33 }
 0x180   :  { %1170 = vmatpush3.bf16.msra.mxu0 %v1277_v34 }
 0x181   :  { %1171 = vmatprep.subr.bf16.mxu0 %v1447_v33 }
 0x184   :  { %1172 = vmatpush3.bf16.msra.mxu0 %v1278_v13 }
 0x185   :  { %1173 = vmatprep.subr.bf16.mxu0 %v1447_v33 }
 0x188   :  { %1174 = vmatpush3.bf16.msra.mxu0 %v1279_v14 }
 0x23e   :  { %v1122_v17 = vpop.f32.mrb[4].mxu0 }
 0x23f   :  { %v1123_v20 = vpop.f32.mrb[5].mxu0 }
 0x240   :  { %v1124_v21 = vadd.f32 %v1123_v20, %v1122_v17  ;;  %v1125_v22 = vpop.f32.mrb[6].mxu0  ;;  %v1144_v23 = vpop.f32.mrb[4].mxu1 }
 0x241   :  { %v1126_v25 = vpop.f32.mrb[7].mxu0  ;;  %v1145_v27 = vpop.f32.mrb[5].mxu1 }
 0x242   :  { %v805_v26 = vadd.f32 %v1124_v21, %v1055_v18  ;;  %v1127_v28 = vadd.f32 %v1126_v25, %v1125_v22  ;;  %v1146_v29 = vadd.f32 %v1145_v27, %v1144_v23  ;;  %v1147_v32 = vpop.f32.mrb[6].mxu1 }
 0x243   :  { %v1148_v36 = vpop.f32.mrb[7].mxu1 }
 0x244   :  { %v808_v35 = vadd.f32 %v1127_v28, %v1055_v18  ;;  %v846_v37 = vadd.f32 %v1146_v29, %v805_v26  ;;  %v1149_v38 = vadd.f32 %v1148_v36, %v1147_v32 }
 0x246   :  { %v852_v39 = vmin.f32 %v846_v37, 20.0  ;;  %v849_v40 = vadd.f32 %v1149_v38, %v808_v35  ;;  %vm854_vm3 = vcmp.gt.f32.partialorder %v846_v37, 20.0 }
 0x248   :  { %v856_v41 = vmul.f32 1.442695, %v852_v39  ;;  %v853_v42 = vmin.f32 %v849_v40, 20.0  ;;  %vm855_vm4 = vcmp.gt.f32.partialorder %v849_v40, 20.0 }
 0x24a   :  { %1312 = vpow2.f32 %v856_v41  ;;  %v858_v43 = vmul.f32 1.442695, %v853_v42 }
 0x24c   :  { %1314 = vpow2.f32 %v858_v43 }
 0x254   :  { %v1313_v44 = vpop.eup %1312 }
 0x255   :  { %v860_v45 = vadd.f32 1.0, %v1313_v44  ;;  %v863_v48 = vmul.f32 -0.5, %v1313_v44  ;;  %v866_v52 = vand.u32 2147483647, %v1313_v44 }
 0x256   :  { %v1315_v46 = vpop.eup %1314 }
 0x257   :  { %1316 = vlog2.f32 %v860_v45  ;;  %v869_v47 = vadd.f32 1.0, %v1315_v46  ;;  %v872_v49 = vmul.f32 -0.5, %v1315_v46  ;;  %v864_v50 = vadd.f32 1.0, %v863_v48 }
 0x258   :  { %v875_v56 = vand.u32 2147483647, %v1315_v46  ;;  %vm867_vm1 = vcmp.lt.f32.partialorder %v866_v52, 0.0004427343 }
 0x259   :  { %1318 = vlog2.f32 %v869_v47  ;;  %v873_v53 = vadd.f32 1.0, %v872_v49  ;;  %v865_v51 = vmul.f32 %v1313_v44, %v864_v50 }
 0x25a   :  { %vm876_vm2 = vcmp.lt.f32.partialorder %v875_v56, 0.0004427343 }
 0x25b   :  { %v874_v62 = vmul.f32 %v1315_v46, %v873_v53 }
 0x261   :  { %v1317_v55 = vpop.eup %1316 }
 0x262   :  { %v862_v57 = vmul.f32 0.6931472, %v1317_v55 }
 0x263   :  { %v1319_v58 = vpop.eup %1318 }
 0x264   :  { %v868_v61 = vsel %vm867_vm1, %v865_v51, %v862_v57  ;;  %v871_v54 = vmul.f32 0.6931472, %v1319_v58 }
 0x265   :  { %v878_v63 = vsel %vm854_vm3, %v846_v37, %v868_v61 }
 0x266   :  { %v877_v15 = vsel %vm876_vm2, %v874_v62, %v871_v54 }
 0x267   :  { %v879_v16 = vsel %vm855_vm4, %v849_v40, %v877_v15 }
 0x268   :  { %v880_v30 = vpack.c.bf16 %v879_v16, %v878_v63 }
 0x26a   :  { %1176 = vmatmul.mubr.bf16.vlgmr.msra.gmra.mrb[8].mxu0 %v880_v30 }
 0x33d   :  { %v986_v1 = vpop.f32.mrb[8].mxu0 }
 0x33e   :  { %v1177_v2 = vpop.f32.mrb[9].mxu0  ;;  %v987_v31 = vadd.f32 %v1088_v0, %v986_v1 }
 0x33f   :  { %v989_v3 = vpop.f32.mrb[10].mxu0 }
 0x340   :  { %v990_v4 = vadd.f32 %v1088_v0, %v989_v3  ;;  %v1178_v5 = vpop.f32.mrb[11].mxu0 }
 0x342   :  { %v1104_v6 = vpack.c.bf16 %v990_v4, %v987_v31 }
 0x344   :  { %1105 = vst [vmem:[#allocation10] sm:$0xff] %v1104_v6  }
 0x345   :  { %1419 = shalt.err (!%p1416_p8)
}
 0x346   :  { %s1420_s12 = scalar_lea.hbm %s1681_s7, 128 }
 0x347   :  { %p1421_p9 = scmp.ne.s32.totalorder %s1681_s7, %s1420_s12  ;;  %p1424_p10 = scmp.lt.u32.totalorder %s1420_s12, %s1681_s7 }
 0x349   :  { %p1426_p11 = pnand %p1424_p10, %p1421_p9 }
 0x34b   :  { %1429 = shalt.err (!%p1426_p11)
}
 0x34c   :  { %1014 = dma.vmem_to_hbm [thread:$0]  %s1009_s9, 128, %s1681_s7, [#allocation4], %s1442_s1, %s1442_s1, %s1443_s25  }
 0x34d   :  { %1436 = dma.done.wait [#allocation4], 128  }
 0x34e   :  { %1437 = vsyncadd [#allocation4], 4294967168 }
 0x34f   :  { %1018 = vsyncpa [#allocation3], 1 }
 0x350   :  { %1019 = vsyncpa [#allocation6], 1 }
 0x351   :  { %1020 = vsyncpa [#allocation9], 1 }
 0x352   :  { %1021 = vsyncpa [#allocation4], 1 }

</bundles_post_ra>
